<compile_context>
chip_gen: v6e
topology: v6e:2x2x1
jax: 0.10.0
libtpu: 0.0.40
codegen_flags: <defaults>
</compile_context>

<pallas_src>
import functools

import jax
import jax.numpy as jnp
from jax.experimental import pallas as pl
from jax.experimental.pallas import tpu as pltpu

# Small, module-consistent sizes (original: input_size=4096, attention
# hidden=1024, linear1 hidden=1024, windowSize=15). Scaled for the demo run.
B = 2        # independent sequences (folded into matmul M)
N = 8        # frames per sequence
D = 256      # input feature size          (orig 4096)
A = 128      # self-attention hidden size  (orig 1024)
H = 128      # linear1 hidden size         (orig 1024)
W = 15       # windowSize                  (orig 15)
W_PAD = 128  # lane-dense padded head width
TK = 128     # D-contraction tile          (orig 512-1024; keep <=1024 on v7x)
B_BLK = 2    # sequences per grid step

_EPS = 1e-5


def _layer_norm(y, gamma, beta):
    mu = jnp.mean(y, axis=-1, keepdims=True)
    var = jnp.mean((y - mu) ** 2, axis=-1, keepdims=True)
    return (y - mu) * jax.lax.rsqrt(var + _EPS) * gamma + beta


def telnet_kernel(x_ref, wqkv_ref, wo_ref,
                  g1_ref, be1_ref, w1_ref, b1_ref,
                  g2_ref, be2_ref, w2_ref, b2_ref,
                  out_ref,
                  qkv_acc, x_sc, *, n_seq):
    k = pl.program_id(1)
    nk = pl.num_programs(1)
    rows, tk = x_ref.shape
    a = wo_ref.shape[0]
    b_blk = rows // n_seq

    # ---- init fused Q/K/V accumulator for this row-block ----
    @pl.when(k == 0)
    def _():
        qkv_acc[...] = jnp.zeros_like(qkv_acc)

    # ---- fused partial Q/K/V projection over this D-tile (bf16 MXU, f32 acc),
    #      with the batch folded into the matmul M dimension ----
    x_blk = x_ref[...]                                            # (rows, TK) bf16
    qkv_acc[...] += jnp.dot(x_blk, wqkv_ref[...],
                            preferred_element_type=jnp.float32)   # (rows, 3A)

    # Stash this D-tile for the residual + LayerNorm1 (single HBM pass on x).
    col = pl.multiple_of(k * tk, tk)
    x_sc[:, pl.ds(col, tk)] = x_blk

    # ---- finalize: attention, residual, layernorms, MLP head ----
    @pl.when(k == nk - 1)
    def _():
        qkv = qkv_acc[...]                                        # (rows, 3A) f32
        Qp = qkv[:, 0 * a:1 * a].reshape(b_blk, n_seq, a)         # 0.06 folded in
        Kp = qkv[:, 1 * a:2 * a].reshape(b_blk, n_seq, a)
        Vp = qkv[:, 2 * a:3 * a].reshape(b_blk, n_seq, a)

        # Per-sequence attention: contract the A axis (no explicit transpose).
        logits = jnp.einsum("bqa,bka->bqk", Qp, Kp,
                            preferred_element_type=jnp.float32)   # (b, n, n)
        m = jnp.max(logits, axis=-1, keepdims=True)
        e = jnp.exp(logits - m)
        att = e * pl.reciprocal(jnp.sum(e, axis=-1, keepdims=True), approx=True)
        # TODO(synk): dropout (p=0.5) layers are identity in eval/inference mode.
        y = jnp.einsum("bqk,bka->bqa", att, Vp,
                       preferred_element_type=jnp.float32)        # (b, n, A)
        y = y.reshape(rows, a)

        att_out = jnp.dot(y.astype(jnp.bfloat16), wo_ref[...],
                          preferred_element_type=jnp.float32)     # (rows, D)

        # residual + LayerNorm1
        y = att_out + x_sc[...].astype(jnp.float32)
        y = _layer_norm(y, g1_ref[...], be1_ref[...])

        # linear1 + ReLU + LayerNorm2
        h = jnp.dot(y.astype(jnp.bfloat16), w1_ref[...],
                    preferred_element_type=jnp.float32) + b1_ref[...]
        h = jnp.maximum(h, 0.0)
        h = _layer_norm(h, g2_ref[...], be2_ref[...])

        # linear2 (zero-padded to 128 lanes) + exact sigmoid, lane-dense store
        z = jnp.dot(h.astype(jnp.bfloat16), w2_ref[...],
                    preferred_element_type=jnp.float32) + b2_ref[...]
        out_ref[...] = 1.0 / (1.0 + jnp.exp(-z))                  # (rows, W_PAD)


def prepare_params(params):
    """PyTorch-style f32 params -> kernel layout (fused bf16 QKV, padded head)."""
    pad = W_PAD - params["w2"].shape[1]
    wqkv = jnp.concatenate(
        [params["wq"] * 0.06, params["wk"], params["wv"]], axis=1)  # (D, 3A)
    return dict(
        wqkv=wqkv.astype(jnp.bfloat16),
        wo=params["wo"].astype(jnp.bfloat16),
        g1=params["g1"], be1=params["be1"],
        w1=params["w1"].astype(jnp.bfloat16),
        b1=params["b1"],
        g2=params["g2"], be2=params["be2"],
        w2=jnp.pad(params["w2"], ((0, 0), (0, pad))).astype(jnp.bfloat16),
        b2=jnp.pad(params["b2"], ((0, 0), (0, pad))),
    )


def telnet_forward(feature, kp):
    """feature: (B, N, D) float32.  Returns (B, N*W) (PyTorch: y.view(1,-1) per seq)."""
    bsz, n, d = feature.shape
    assert bsz % B_BLK == 0 and d % TK == 0
    nb = bsz // B_BLK
    kt = d // TK
    rows = B_BLK * n

    a = kp["wo"].shape[0]
    h = kp["w1"].shape[1]

    # bf16 once in the wrapper; fold batch into the row dimension.
    x2d = feature.astype(jnp.bfloat16).reshape(bsz * n, d)

    grid_spec = pltpu.PrefetchScalarGridSpec(
        num_scalar_prefetch=0,
        grid=(nb, kt),
        in_specs=[
            pl.BlockSpec((rows, TK), lambda b, k: (b, k)),       # x, D-tiled
            pl.BlockSpec((TK, 3 * a), lambda b, k: (k, 0)),      # fused K|Q|V weight
            pl.BlockSpec((a, d), lambda b, k: (0, 0)),           # output_linear
            pl.BlockSpec((1, d), lambda b, k: (0, 0)),           # LN1 gamma
            pl.BlockSpec((1, d), lambda b, k: (0, 0)),           # LN1 beta
            pl.BlockSpec((d, h), lambda b, k: (0, 0)),           # linear1 W
            pl.BlockSpec((1, h), lambda b, k: (0, 0)),           # linear1 b
            pl.BlockSpec((1, h), lambda b, k: (0, 0)),           # LN2 gamma
            pl.BlockSpec((1, h), lambda b, k: (0, 0)),           # LN2 beta
            pl.BlockSpec((h, W_PAD), lambda b, k: (0, 0)),       # linear2 W (padded)
            pl.BlockSpec((1, W_PAD), lambda b, k: (0, 0)),       # linear2 b (padded)
        ],
        out_specs=pl.BlockSpec((rows, W_PAD), lambda b, k: (b, 0)),
        scratch_shapes=[
            pltpu.VMEM((rows, 3 * a), jnp.float32),    # fused Q/K/V accumulator
            pltpu.VMEM((rows, d), jnp.bfloat16),       # x copy for residual/LN1
        ],
    )

    flops = (2 * bsz * n * d * 3 * a          # fused QKV projection
             + 2 * bsz * n * n * a * 2        # attention logits + weighted sum
             + 2 * bsz * n * a * d            # output_linear
             + 2 * bsz * n * d * h            # linear1
             + 2 * bsz * n * h * W_PAD)       # linear2
    bytes_accessed = (x2d.size * 2
                      + (kp["wqkv"].size + kp["wo"].size + kp["w1"].size
                         + kp["w2"].size) * 2
                      + (kp["g1"].size + kp["be1"].size + kp["b1"].size
                         + kp["g2"].size + kp["be2"].size + kp["b2"].size) * 4
                      + bsz * n * W_PAD * 4)
    transcendentals = bsz * n * n + bsz * n * W_PAD

    out = pl.pallas_call(
        functools.partial(telnet_kernel, n_seq=n),
        out_shape=jax.ShapeDtypeStruct((bsz * n, W_PAD), jnp.float32),
        grid_spec=grid_spec,
        compiler_params=pltpu.CompilerParams(
            dimension_semantics=("parallel", "arbitrary"),
            vmem_limit_bytes=48 * 1024 * 1024,
        ),
        cost_estimate=pl.CostEstimate(
            flops=int(flops),
            transcendentals=int(transcendentals),
            bytes_accessed=int(bytes_accessed)),
    )(x2d, kp["wqkv"], kp["wo"],
      kp["g1"], kp["be1"], kp["w1"], kp["b1"],
      kp["g2"], kp["be2"], kp["w2"], kp["b2"])

    # strip the lane padding; flatten per sequence (PyTorch: y.view(1, -1))
    return out.reshape(bsz, n, W_PAD)[:, :, :W].reshape(bsz, -1)


def telnet_reference(feature, kp):
    """Pure-JAX reference mirroring the kernel's numerics (bf16 weights/acts)."""
    x = feature.astype(jnp.bfloat16)
    a = kp["wo"].shape[0]
    qkv = jnp.einsum("bnd,de->bne", x, kp["wqkv"],
                     preferred_element_type=jnp.float32)
    Qp, Kp, Vp = qkv[..., :a], qkv[..., a:2 * a], qkv[..., 2 * a:]
    logits = jnp.einsum("bqa,bka->bqk", Qp, Kp)
    att = jax.nn.softmax(logits, axis=-1)
    y = jnp.einsum("bqk,bka->bqa", att, Vp)
    att_out = jnp.einsum("bna,ad->bnd", y.astype(jnp.bfloat16), kp["wo"],
                         preferred_element_type=jnp.float32)
    y = att_out + x.astype(jnp.float32)
    y = _layer_norm(y, kp["g1"], kp["be1"])
    hh = jnp.einsum("bnd,dh->bnh", y.astype(jnp.bfloat16), kp["w1"],
                    preferred_element_type=jnp.float32) + kp["b1"]
    hh = jnp.maximum(hh, 0.0)
    hh = _layer_norm(hh, kp["g2"], kp["be2"])
    z = jnp.einsum("bnh,hw->bnw", hh.astype(jnp.bfloat16), kp["w2"],
                   preferred_element_type=jnp.float32) + kp["b2"]
    out = jax.nn.sigmoid(z)
    return out[:, :, :W].reshape(feature.shape[0], -1)


def init_params(key):
    ks = jax.random.split(key, 8)
    s = 0.02
    return {
        # SelfAttention: K/Q/V (D->A, no bias), output_linear (A->D, no bias)
        "wk": s * jax.random.normal(ks[0], (D, A), jnp.float32),
        "wq": s * jax.random.normal(ks[1], (D, A), jnp.float32),
        "wv": s * jax.random.normal(ks[2], (D, A), jnp.float32),
        "wo": s * jax.random.normal(ks[3], (A, D), jnp.float32),
        # LayerNorm1 over D
        "g1": jnp.ones((1, D), jnp.float32),
        "be1": jnp.zeros((1, D), jnp.float32),
        # linear1: D -> H (with bias)
        "w1": s * jax.random.normal(ks[4], (D, H), jnp.float32),
        "b1": s * jax.random.normal(ks[5], (1, H), jnp.float32),
        # LayerNorm2 over H
        "g2": jnp.ones((1, H), jnp.float32),
        "be2": jnp.zeros((1, H), jnp.float32),
        # linear2: H -> W (with bias)
        "w2": s * jax.random.normal(ks[6], (H, W), jnp.float32),
        "b2": s * jax.random.normal(ks[7], (1, W), jnp.float32),
    }


if __name__ == "__main__":
    key = jax.random.PRNGKey(0)
    k_feat, k_par = jax.random.split(key)
    feature = jax.random.normal(k_feat, (B, N, D), jnp.float32)
    params = init_params(k_par)
    kparams = prepare_params(params)

    out = telnet_forward(feature, kparams)
    out = jax.block_until_ready(out)

    assert out.shape == (B, N * W), out.shape
    assert bool(jnp.all(jnp.isfinite(out)))
    assert bool(jnp.all((out >= 0.0) & (out <= 1.0)))  # exact sigmoid range

    ref = telnet_reference(feature, kparams)
    max_err = float(jnp.max(jnp.abs(out - ref)))
    assert max_err < 2e-2, f"max abs error vs reference: {max_err}"

    print("KERNEL_OK")
</pallas_src>

<mosaic_0001>
module attributes {stable_mosaic.version = 11 : i64} {
  func.func @telnet_kernel(%arg0: i32, %arg1: i32, %arg2: memref<16x128xbf16, #tpu.memory_space<vmem>>, %arg3: memref<128x384xbf16, #tpu.memory_space<vmem>>, %arg4: memref<128x256xbf16, #tpu.memory_space<vmem>>, %arg5: memref<1x256xf32, #tpu.memory_space<vmem>>, %arg6: memref<1x256xf32, #tpu.memory_space<vmem>>, %arg7: memref<256x128xbf16, #tpu.memory_space<vmem>>, %arg8: memref<1x128xf32, #tpu.memory_space<vmem>>, %arg9: memref<1x128xf32, #tpu.memory_space<vmem>>, %arg10: memref<1x128xf32, #tpu.memory_space<vmem>>, %arg11: memref<128x128xbf16, #tpu.memory_space<vmem>>, %arg12: memref<1x128xf32, #tpu.memory_space<vmem>>, %arg13: memref<16x128xf32, #tpu.memory_space<vmem>>, %arg14: memref<16x384xf32, #tpu.memory_space<vmem>>, %arg15: memref<16x256xbf16, #tpu.memory_space<vmem>>) attributes {dimension_semantics = [#tpu.dimension_semantics<parallel>, #tpu.dimension_semantics<arbitrary>], iteration_bounds = array<i64: 1, 2>, scalar_prefetch = 0 : i64, scratch_operands = 2 : i64, tpu.core_type = #tpu.core_type<tc>, window_params = [{transform_indices = @transform_0, window_bounds = array<i64: 16, 128>}, {transform_indices = @transform_1, window_bounds = array<i64: 128, 384>}, {pipeline_mode = #tpu.pipeline_mode<synchronous>, transform_indices = @transform_2, window_bounds = array<i64: 128, 256>}, {pipeline_mode = #tpu.pipeline_mode<synchronous>, transform_indices = @transform_3, window_bounds = array<i64: 1, 256>}, {pipeline_mode = #tpu.pipeline_mode<synchronous>, transform_indices = @transform_4, window_bounds = array<i64: 1, 256>}, {pipeline_mode = #tpu.pipeline_mode<synchronous>, transform_indices = @transform_5, window_bounds = array<i64: 256, 128>}, {pipeline_mode = #tpu.pipeline_mode<synchronous>, transform_indices = @transform_6, window_bounds = array<i64: 1, 128>}, {pipeline_mode = #tpu.pipeline_mode<synchronous>, transform_indices = @transform_7, window_bounds = array<i64: 1, 128>}, {pipeline_mode = #tpu.pipeline_mode<synchronous>, transform_indices = @transform_8, window_bounds = array<i64: 1, 128>}, {pipeline_mode = #tpu.pipeline_mode<synchronous>, transform_indices = @transform_9, window_bounds = array<i64: 128, 128>}, {pipeline_mode = #tpu.pipeline_mode<synchronous>, transform_indices = @transform_10, window_bounds = array<i64: 1, 128>}, {transform_indices = @transform_11, window_bounds = array<i64: 16, 128>}]} {
    %c0_i32 = arith.constant 0 : i32
    %0 = arith.cmpi eq, %arg1, %c0_i32 : i32
    %1 = arith.extui %0 : i1 to i32
    %c0_i32_0 = arith.constant 0 : i32
    %2 = arith.cmpi ne, %1, %c0_i32_0 : i32
    scf.if %2 {
      %cst_10 = arith.constant 0.000000e+00 : f32
      %16 = vector.broadcast %cst_10 : f32 to vector<16x384xf32>
      %c0_11 = arith.constant 0 : index
      %c0_12 = arith.constant 0 : index
      %17 = vector.load %arg14[%c0_11, %c0_12] : memref<16x384xf32, #tpu.memory_space<vmem>>, vector<16x384xf32>
      tpu.vector_store %arg14[%c0_11, %c0_12], %16 {strides = array<i32>} : memref<16x384xf32, #tpu.memory_space<vmem>>, vector<16x384xf32>,
    } else {
    }
    %c0 = arith.constant 0 : index
    %c0_1 = arith.constant 0 : index
    %3 = vector.load %arg2[%c0, %c0_1] : memref<16x128xbf16, #tpu.memory_space<vmem>>, vector<16x128xbf16>
    %c0_2 = arith.constant 0 : index
    %c0_3 = arith.constant 0 : index
    %4 = vector.load %arg14[%c0_2, %c0_3] : memref<16x384xf32, #tpu.memory_space<vmem>>, vector<16x384xf32>
    %c0_4 = arith.constant 0 : index
    %c0_5 = arith.constant 0 : index
    %5 = vector.load %arg3[%c0_4, %c0_5] : memref<128x384xbf16, #tpu.memory_space<vmem>>, vector<128x384xbf16>
    %cst = arith.constant dense<0.000000e+00> : vector<16x384xf32>
    %6 = tpu.matmul %3, %5, %cst {dimension_numbers = #tpu.dot_dimension_numbers<[1], [0], [0], [1], [0, 0, 1, 1], [], []>} : vector<16x128xbf16>, vector<128x384xbf16>, vector<16x384xf32> -> vector<16x384xf32>
    %7 = arith.addf %4, %6 : vector<16x384xf32>
    %c0_6 = arith.constant 0 : index
    %c0_7 = arith.constant 0 : index
    %8 = vector.load %arg14[%c0_6, %c0_7] : memref<16x384xf32, #tpu.memory_space<vmem>>, vector<16x384xf32>
    tpu.vector_store %arg14[%c0_6, %c0_7], %7 {strides = array<i32>} : memref<16x384xf32, #tpu.memory_space<vmem>>, vector<16x384xf32>,
    %c128_i32 = arith.constant 128 : i32
    %9 = arith.muli %arg1, %c128_i32 : i32
    %10 = tpu.assume_multiple %9, 128 : i32
    %c0_8 = arith.constant 0 : index
    %11 = arith.index_cast %10 : i32 to index
    %12 = vector.load %arg15[%c0_8, %11] : memref<16x256xbf16, #tpu.memory_space<vmem>>, vector<16x128xbf16>
    tpu.vector_store %arg15[%c0_8, %11], %3 {strides = array<i32>} : memref<16x256xbf16, #tpu.memory_space<vmem>>, vector<16x128xbf16>,
    %c1_i32 = arith.constant 1 : i32
    %13 = arith.cmpi eq, %arg1, %c1_i32 : i32
    %14 = arith.extui %13 : i1 to i32
    %c0_i32_9 = arith.constant 0 : i32
    %15 = arith.cmpi ne, %14, %c0_i32_9 : i32
    scf.if %15 {
      %c0_10 = arith.constant 0 : index
      %c0_11 = arith.constant 0 : index
      %16 = vector.load %arg14[%c0_10, %c0_11] : memref<16x384xf32, #tpu.memory_space<vmem>>, vector<16x384xf32>
      %17 = vector.extract_strided_slice %16 {offsets = [0, 0], sizes = [16, 128], strides = [1, 1]} : vector<16x384xf32> to vector<16x128xf32>
      %18 = vector.shape_cast %17 : vector<16x128xf32> to vector<2x8x128xf32>
      %19 = vector.extract_strided_slice %16 {offsets = [0, 128], sizes = [16, 128], strides = [1, 1]} : vector<16x384xf32> to vector<16x128xf32>
      %20 = vector.shape_cast %19 : vector<16x128xf32> to vector<2x8x128xf32>
      %21 = vector.extract_strided_slice %16 {offsets = [0, 256], sizes = [16, 128], strides = [1, 1]} : vector<16x384xf32> to vector<16x128xf32>
      %22 = vector.shape_cast %21 : vector<16x128xf32> to vector<2x8x128xf32>
      "tpu.trace_start"() <{level = 10 : i32, message = "bqa,bka->bqk"}> : () -> ()
      %cst_12 = arith.constant dense<0.000000e+00> : vector<2x8x8xf32>
      %23 = tpu.matmul %18, %20, %cst_12 {dimension_numbers = #tpu.dot_dimension_numbers<[2], [2], [1], [1], [0, 0, 0, 1, 1, 1], [0], [0]>} : vector<2x8x128xf32>, vector<2x8x128xf32>, vector<2x8x8xf32> -> vector<2x8x8xf32>
      "tpu.trace_stop"() : () -> ()
      %cst_13 = arith.constant dense<0xFF800000> : vector<2x8xf32>
      %24 = vector.multi_reduction <maximumf>, %23, %cst_13 [2] : vector<2x8x8xf32> to vector<2x8xf32>
      %25 = vector.shape_cast %24 : vector<2x8xf32> to vector<2x8x1xf32>
      %26 = vector.broadcast %25 : vector<2x8x1xf32> to vector<2x8x8xf32>
      %27 = arith.subf %23, %26 : vector<2x8x8xf32>
      %28 = math.exp %27 : vector<2x8x8xf32>
      %cst_14 = arith.constant dense<0.000000e+00> : vector<2x8xf32>
      %29 = vector.multi_reduction <add>, %28, %cst_14 [2] : vector<2x8x8xf32> to vector<2x8xf32>
      %30 = vector.shape_cast %29 : vector<2x8xf32> to vector<2x8x1xf32>
      %31 = tpu.reciprocal %30 {approx = true} : vector<2x8x1xf32> -> vector<2x8x1xf32>
      %32 = vector.broadcast %31 : vector<2x8x1xf32> to vector<2x8x8xf32>
      %33 = arith.mulf %28, %32 : vector<2x8x8xf32>
      "tpu.trace_start"() <{level = 10 : i32, message = "bqk,bka->bqa"}> : () -> ()
      %cst_15 = arith.constant dense<0.000000e+00> : vector<2x8x128xf32>
      %34 = tpu.matmul %33, %22, %cst_15 {dimension_numbers = #tpu.dot_dimension_numbers<[2], [1], [1], [2], [0, 0, 0, 1, 1, 2], [0], [0]>} : vector<2x8x8xf32>, vector<2x8x128xf32>, vector<2x8x128xf32> -> vector<2x8x128xf32>
      "tpu.trace_stop"() : () -> ()
      %35 = vector.shape_cast %34 : vector<2x8x128xf32> to vector<16x128xf32>
      %36 = arith.truncf %35 : vector<16x128xf32> to vector<16x128xbf16>
      %c0_16 = arith.constant 0 : index
      %c0_17 = arith.constant 0 : index
      %37 = vector.load %arg4[%c0_16, %c0_17] : memref<128x256xbf16, #tpu.memory_space<vmem>>, vector<128x256xbf16>
      %cst_18 = arith.constant dense<0.000000e+00> : vector<16x256xf32>
      %38 = tpu.matmul %36, %37, %cst_18 {dimension_numbers = #tpu.dot_dimension_numbers<[1], [0], [0], [1], [0, 0, 1, 1], [], []>} : vector<16x128xbf16>, vector<128x256xbf16>, vector<16x256xf32> -> vector<16x256xf32>
      %c0_19 = arith.constant 0 : index
      %c0_20 = arith.constant 0 : index
      %39 = vector.load %arg15[%c0_19, %c0_20] : memref<16x256xbf16, #tpu.memory_space<vmem>>, vector<16x256xbf16>
      %40 = arith.extf %39 : vector<16x256xbf16> to vector<16x256xf32>
      %41 = arith.addf %38, %40 : vector<16x256xf32>
      %c0_21 = arith.constant 0 : index
      %c0_22 = arith.constant 0 : index
      %42 = vector.load %arg5[%c0_21, %c0_22] : memref<1x256xf32, #tpu.memory_space<vmem>>, vector<1x256xf32>
      %c0_23 = arith.constant 0 : index
      %c0_24 = arith.constant 0 : index
      %43 = vector.load %arg6[%c0_23, %c0_24] : memref<1x256xf32, #tpu.memory_space<vmem>>, vector<1x256xf32>
      %cst_25 = arith.constant dense<0.000000e+00> : vector<16xf32>
      %44 = vector.multi_reduction <add>, %41, %cst_25 [1] : vector<16x256xf32> to vector<16xf32>
      %45 = vector.shape_cast %44 : vector<16xf32> to vector<16x1xf32>
      %cst_26 = arith.constant 2.560000e+02 : f32
      %46 = vector.broadcast %cst_26 : f32 to vector<16x1xf32>
      %47 = arith.divf %45, %46 : vector<16x1xf32>
      %48 = vector.broadcast %47 : vector<16x1xf32> to vector<16x256xf32>
      %49 = arith.subf %41, %48 : vector<16x256xf32>
      %50 = arith.mulf %49, %49 : vector<16x256xf32>
      %cst_27 = arith.constant dense<0.000000e+00> : vector<16xf32>
      %51 = vector.multi_reduction <add>, %50, %cst_27 [1] : vector<16x256xf32> to vector<16xf32>
      %52 = vector.shape_cast %51 : vector<16xf32> to vector<16x1xf32>
      %cst_28 = arith.constant 2.560000e+02 : f32
      %53 = vector.broadcast %cst_28 : f32 to vector<16x1xf32>
      %54 = arith.divf %52, %53 : vector<16x1xf32>
      %55 = vector.broadcast %47 : vector<16x1xf32> to vector<16x256xf32>
      %56 = arith.subf %41, %55 : vector<16x256xf32>
      %cst_29 = arith.constant 9.99999974E-6 : f32
      %57 = vector.broadcast %cst_29 : f32 to vector<16x1xf32>
      %58 = arith.addf %54, %57 : vector<16x1xf32>
      %59 = math.rsqrt %58 : vector<16x1xf32>
      %60 = vector.broadcast %59 : vector<16x1xf32> to vector<16x256xf32>
      %61 = arith.mulf %56, %60 : vector<16x256xf32>
      %62 = vector.broadcast %42 : vector<1x256xf32> to vector<16x256xf32>
      %63 = arith.mulf %61, %62 : vector<16x256xf32>
      %64 = vector.broadcast %43 : vector<1x256xf32> to vector<16x256xf32>
      %65 = arith.addf %63, %64 : vector<16x256xf32>
      %66 = arith.truncf %65 : vector<16x256xf32> to vector<16x256xbf16>
      %c0_30 = arith.constant 0 : index
      %c0_31 = arith.constant 0 : index
      %67 = vector.load %arg7[%c0_30, %c0_31] : memref<256x128xbf16, #tpu.memory_space<vmem>>, vector<256x128xbf16>
      %cst_32 = arith.constant dense<0.000000e+00> : vector<16x128xf32>
      %68 = tpu.matmul %66, %67, %cst_32 {dimension_numbers = #tpu.dot_dimension_numbers<[1], [0], [0], [1], [0, 0, 1, 1], [], []>} : vector<16x256xbf16>, vector<256x128xbf16>, vector<16x128xf32> -> vector<16x128xf32>
      %c0_33 = arith.constant 0 : index
      %c0_34 = arith.constant 0 : index
      %69 = vector.load %arg8[%c0_33, %c0_34] : memref<1x128xf32, #tpu.memory_space<vmem>>, vector<1x128xf32>
      %70 = vector.broadcast %69 : vector<1x128xf32> to vector<16x128xf32>
      %71 = arith.addf %68, %70 : vector<16x128xf32>
      %cst_35 = arith.constant 0.000000e+00 : f32
      %72 = vector.broadcast %cst_35 : f32 to vector<16x128xf32>
      %73 = arith.maximumf %71, %72 : vector<16x128xf32>
      %c0_36 = arith.constant 0 : index
      %c0_37 = arith.constant 0 : index
      %74 = vector.load %arg9[%c0_36, %c0_37] : memref<1x128xf32, #tpu.memory_space<vmem>>, vector<1x128xf32>
      %c0_38 = arith.constant 0 : index
      %c0_39 = arith.constant 0 : index
      %75 = vector.load %arg10[%c0_38, %c0_39] : memref<1x128xf32, #tpu.memory_space<vmem>>, vector<1x128xf32>
      %cst_40 = arith.constant dense<0.000000e+00> : vector<16xf32>
      %76 = vector.multi_reduction <add>, %73, %cst_40 [1] : vector<16x128xf32> to vector<16xf32>
      %77 = vector.shape_cast %76 : vector<16xf32> to vector<16x1xf32>
      %cst_41 = arith.constant 1.280000e+02 : f32
      %78 = vector.broadcast %cst_41 : f32 to vector<16x1xf32>
      %79 = arith.divf %77, %78 : vector<16x1xf32>
      %80 = vector.broadcast %79 : vector<16x1xf32> to vector<16x128xf32>
      %81 = arith.subf %73, %80 : vector<16x128xf32>
      %82 = arith.mulf %81, %81 : vector<16x128xf32>
      %cst_42 = arith.constant dense<0.000000e+00> : vector<16xf32>
      %83 = vector.multi_reduction <add>, %82, %cst_42 [1] : vector<16x128xf32> to vector<16xf32>
      %84 = vector.shape_cast %83 : vector<16xf32> to vector<16x1xf32>
      %cst_43 = arith.constant 1.280000e+02 : f32
      %85 = vector.broadcast %cst_43 : f32 to vector<16x1xf32>
      %86 = arith.divf %84, %85 : vector<16x1xf32>
      %87 = vector.broadcast %79 : vector<16x1xf32> to vector<16x128xf32>
      %88 = arith.subf %73, %87 : vector<16x128xf32>
      %cst_44 = arith.constant 9.99999974E-6 : f32
      %89 = vector.broadcast %cst_44 : f32 to vector<16x1xf32>
      %90 = arith.addf %86, %89 : vector<16x1xf32>
      %91 = math.rsqrt %90 : vector<16x1xf32>
      %92 = vector.broadcast %91 : vector<16x1xf32> to vector<16x128xf32>
      %93 = arith.mulf %88, %92 : vector<16x128xf32>
      %94 = vector.broadcast %74 : vector<1x128xf32> to vector<16x128xf32>
      %95 = arith.mulf %93, %94 : vector<16x128xf32>
      %96 = vector.broadcast %75 : vector<1x128xf32> to vector<16x128xf32>
      %97 = arith.addf %95, %96 : vector<16x128xf32>
      %98 = arith.truncf %97 : vector<16x128xf32> to vector<16x128xbf16>
      %c0_45 = arith.constant 0 : index
      %c0_46 = arith.constant 0 : index
      %99 = vector.load %arg11[%c0_45, %c0_46] : memref<128x128xbf16, #tpu.memory_space<vmem>>, vector<128x128xbf16>
      %cst_47 = arith.constant dense<0.000000e+00> : vector<16x128xf32>
      %100 = tpu.matmul %98, %99, %cst_47 {dimension_numbers = #tpu.dot_dimension_numbers<[1], [0], [0], [1], [0, 0, 1, 1], [], []>} : vector<16x128xbf16>, vector<128x128xbf16>, vector<16x128xf32> -> vector<16x128xf32>
      %c0_48 = arith.constant 0 : index
      %c0_49 = arith.constant 0 : index
      %101 = vector.load %arg12[%c0_48, %c0_49] : memref<1x128xf32, #tpu.memory_space<vmem>>, vector<1x128xf32>
      %102 = vector.broadcast %101 : vector<1x128xf32> to vector<16x128xf32>
      %103 = arith.addf %100, %102 : vector<16x128xf32>
      %cst_50 = arith.constant 0.000000e+00 : f32
      %104 = vector.broadcast %cst_50 : f32 to vector<16x128xf32>
      %105 = arith.subf %104, %103 : vector<16x128xf32>
      %106 = math.exp %105 : vector<16x128xf32>
      %cst_51 = arith.constant 1.000000e+00 : f32
      %107 = vector.broadcast %cst_51 : f32 to vector<16x128xf32>
      %108 = arith.addf %107, %106 : vector<16x128xf32>
      %cst_52 = arith.constant 1.000000e+00 : f32
      %109 = vector.broadcast %cst_52 : f32 to vector<16x128xf32>
      %110 = arith.divf %109, %108 : vector<16x128xf32>
      %c0_53 = arith.constant 0 : index
      %c0_54 = arith.constant 0 : index
      %111 = vector.load %arg13[%c0_53, %c0_54] : memref<16x128xf32, #tpu.memory_space<vmem>>, vector<16x128xf32>
      tpu.vector_store %arg13[%c0_53, %c0_54], %110 {strides = array<i32>} : memref<16x128xf32, #tpu.memory_space<vmem>>, vector<16x128xf32>,
    } else {
    }
    return
  }
  func.func @transform_0(%arg0: i32, %arg1: i32) -> (i32, i32) {
    %c0_i32 = arith.constant 0 : i32
    return %arg0, %arg1 : i32, i32
  }
  func.func @transform_1(%arg0: i32, %arg1: i32) -> (i32, i32) {
    %c0_i32 = arith.constant 0 : i32
    %c0_i32_0 = arith.constant 0 : i32
    return %arg1, %c0_i32 : i32, i32
  }
  func.func @transform_2(%arg0: i32, %arg1: i32) -> (i32, i32) {
    %c0_i32 = arith.constant 0 : i32
    %c0_i32_0 = arith.constant 0 : i32
    %c0_i32_1 = arith.constant 0 : i32
    return %c0_i32, %c0_i32_0 : i32, i32
  }
  func.func @transform_3(%arg0: i32, %arg1: i32) -> (i32, i32) {
    %c0_i32 = arith.constant 0 : i32
    %c0_i32_0 = arith.constant 0 : i32
    %c0_i32_1 = arith.constant 0 : i32
    return %c0_i32, %c0_i32_0 : i32, i32
  }
  func.func @transform_4(%arg0: i32, %arg1: i32) -> (i32, i32) {
    %c0_i32 = arith.constant 0 : i32
    %c0_i32_0 = arith.constant 0 : i32
    %c0_i32_1 = arith.constant 0 : i32
    return %c0_i32, %c0_i32_0 : i32, i32
  }
  func.func @transform_5(%arg0: i32, %arg1: i32) -> (i32, i32) {
    %c0_i32 = arith.constant 0 : i32
    %c0_i32_0 = arith.constant 0 : i32
    %c0_i32_1 = arith.constant 0 : i32
    return %c0_i32, %c0_i32_0 : i32, i32
  }
  func.func @transform_6(%arg0: i32, %arg1: i32) -> (i32, i32) {
    %c0_i32 = arith.constant 0 : i32
    %c0_i32_0 = arith.constant 0 : i32
    %c0_i32_1 = arith.constant 0 : i32
    return %c0_i32, %c0_i32_0 : i32, i32
  }
  func.func @transform_7(%arg0: i32, %arg1: i32) -> (i32, i32) {
    %c0_i32 = arith.constant 0 : i32
    %c0_i32_0 = arith.constant 0 : i32
    %c0_i32_1 = arith.constant 0 : i32
    return %c0_i32, %c0_i32_0 : i32, i32
  }
  func.func @transform_8(%arg0: i32, %arg1: i32) -> (i32, i32) {
    %c0_i32 = arith.constant 0 : i32
    %c0_i32_0 = arith.constant 0 : i32
    %c0_i32_1 = arith.constant 0 : i32
    return %c0_i32, %c0_i32_0 : i32, i32
  }
  func.func @transform_9(%arg0: i32, %arg1: i32) -> (i32, i32) {
    %c0_i32 = arith.constant 0 : i32
    %c0_i32_0 = arith.constant 0 : i32
    %c0_i32_1 = arith.constant 0 : i32
    return %c0_i32, %c0_i32_0 : i32, i32
  }
  func.func @transform_10(%arg0: i32, %arg1: i32) -> (i32, i32) {
    %c0_i32 = arith.constant 0 : i32
    %c0_i32_0 = arith.constant 0 : i32
    %c0_i32_1 = arith.constant 0 : i32
    return %c0_i32, %c0_i32_0 : i32, i32
  }
  func.func @transform_11(%arg0: i32, %arg1: i32) -> (i32, i32) {
    %c0_i32 = arith.constant 0 : i32
    %c0_i32_0 = arith.constant 0 : i32
    return %arg0, %c0_i32 : i32, i32
  }
}

</mosaic_0001>

<bundles_post_ra>
// kernel: tpu_custom_call.1
= control target key start
LH: loop header
LB: loop body
LE: loop exit
PB: predicated region body
PF: predicated region fallthrough
CT: control target
= control target key end

     0   :  { %s2797_s0 = inlined_call_operand.hbm [shape: bf16[16,256], index: 0, kind: input, shape index: {}]   ;;  %s2798_s1 = inlined_call_operand.hbm [shape: bf16[256,384], index: 1, kind: input, shape index: {}]   ;;  %s2799_s2 = inlined_call_operand.hbm [shape: bf16[128,256], index: 2, kind: input, shape index: {}]   ;;  %s2800_s3 = inlined_call_operand.vmem [shape: f32[1,256], index: 3, kind: input, shape index: {}]   ;;  %s2801_s4 = inlined_call_operand.vmem [shape: f32[1,256], index: 4, kind: input, shape index: {}]   ;;  %s2802_s5 = inlined_call_operand.hbm [shape: bf16[256,128], index: 5, kind: input, shape index: {}]   ;;  %s2803_s6 = inlined_call_operand.vmem [shape: f32[1,128], index: 6, kind: input, shape index: {}]   ;;  %s2804_s7 = inlined_call_operand.vmem [shape: f32[1,128], index: 7, kind: input, shape index: {}]   ;;  %s2805_s8 = inlined_call_operand.vmem [shape: f32[1,128], index: 8, kind: input, shape index: {}]   ;;  %s2806_s9 = inlined_call_operand.hbm [shape: bf16[128,128], index: 9, kind: input, shape index: {}]   ;;  %s2807_s10 = inlined_call_operand.vmem [shape: f32[1,128], index: 10, kind: input, shape index: {}]   ;;  %s2808_s11 = inlined_call_operand.hbm [shape: f32[16,128], index: 11, kind: output, shape index: {}]  }
   0x1   :  { %2814 = sst [smem:[#allocation20_spill]] %s2797_s0 }
   0x2   :  { %2815 = sst [smem:[#allocation21_spill]] %s2799_s2 }
   0x3   :  { %2816 = sst [smem:[#allocation22_spill]] %s2801_s4 }
   0x4   :  { %2817 = sst [smem:[#allocation23_spill]] %s2802_s5 }
   0x5   :  { %2818 = sst [smem:[#allocation24_spill]] %s2803_s6 }
   0x6   :  { %2819 = sst [smem:[#allocation25_spill]] %s2804_s7 }
   0x7   :  { %2820 = sst [smem:[#allocation26_spill]] %s2805_s8 }
   0x8   :  { %2821 = sst [smem:[#allocation27_spill]] %s2806_s9 }
   0x9   :  { %2822 = sst [smem:[#allocation28_spill]] %s2807_s10 }
   0xa   :  { %2823 = sst [smem:[#allocation29_spill]] %s2808_s11 }
   0xb   :  { %16 = vsyncpa [#allocation5], 0 }
   0xc   :  { %18 = vsyncpa [#allocation5 + $0x1], 0 }
   0xd   :  { %19 = vsyncpa [#allocation8], 0 }
   0xe   :  { %21 = vsyncpa [#allocation8 + $0x1], 0 }
   0xf   :  { %22 = vsyncpa [#allocation11], 0 }
  0x10   :  { %23 = vsyncpa [#allocation6], 0  ;;  %s2526_s17 = smov 0   ;;  %s2528_s18 = smov 0  }
  0x11   :  { %s2530_s19 = smov 0   ;;  %s2532_s20 = smov 0  }
  0x12   :  { %s2534_s21 = smov 0   ;;  %s2536_s22 = smov 0  }
  0x13 LB: > { %s2555_s23 = sadd.s32 4294967295, %s2443_s22   ;;  %p57_p0 = scmp.ne.s32.totalorder %s2431_s19, %s2427_s18  ;;  %s2443_s22 = sphi %s2536_s22, %s29_s22   ;;  %s2439_s21 = sphi %s2534_s21, %s2854_s21   ;;  %s2435_s20 = sphi %s2532_s20, %s2853_s20   ;;  %s2431_s19 = sphi %s2530_s19, %s2852_s19   ;;  %s2427_s18 = sphi %s2528_s18, %s2851_s18   ;;  %s2423_s17 = sphi %s2526_s17, %s2850_s17  }
  0x14   : > { %p58_p1 = scmp.eq.s32.totalorder %s2443_s22, 0  ;;  %p63_p2 = scmp.ne.s32.totalorder %s2427_s18, %s2423_s17 }
  0x15   : > { %p2809_p3 = scmp.eq.s32.totalorder %s2555_s23, 0  ;;  %p1796_p5 = scmp.ge.s32.totalorder %s2443_s22, 1 }
  0x16   : > { %p59_p4 = por %p58_p1, %p57_p0  ;;  %p315_p7 = scmp.lt.s32.totalorder %s2443_s22, 3 }
  0x17   : > { %p2566_p6 = por %p2809_p3, %p63_p2  ;;  %s2445_s27 = smov [#allocation9]  }
  0x18   : > { %p2571_p8 = pnand %p1796_p5, %p315_p7  ;;  %s327_s28 = sshll.u32 %s2445_s27, 4  ;;  %s328_s28 = int_to_ptr.vmem [resolvable:$true] %s327_s28 }
  0x19   : > { %p2041_p10 = scmp.lt.s32.totalorder %s2443_s22, 2  ;;  %s2446_s12 = smov [#allocation10]  }
  0x1a   : > { %p2021_p9 = pneg %p2571_p8  ;;  %s346_s13 = sshll.u32 %s2446_s12, 4  ;;  %s347_s13 = int_to_ptr.vmem [resolvable:$true] %s346_s13 }
  0x1b   : > { %p2584_p12 = pnand %p2041_p10, %p59_p4  ;;  %s2230_s14 = scalar_lea.vmem %s328_s28, 2048 }
  0x1c   : > { %p2580_p11 = pnand %p2021_p9, %p2809_p3  ;;  %p2231_p0 = scmp.ne.s32.totalorder %s328_s28, %s2230_s14 }
  0x1d   : > { %p2238_p5 = scmp.lt.s32.totalorder %s328_s28, %s328_s28  ;;  %p2239_p7 = scmp.lt.s32.totalorder %s2230_s14, %s2230_s14 }
  0x1e   : > { %p2221_p13 = pneg %p2580_p11 }
  0x1f   : > { %p2240_p9 = por %p2239_p7, %p2238_p5 }
  0x20   : > { %p2233_p1 = pnand %p2231_p0, %p2221_p13 }
  0x22   : > { %p2234_p2 = pneg %p2233_p1 }
  0x24   : > { %p2241_p3 = pnand %p2240_p9, %p2234_p2 }
  0x26   : > { %2244 = shalt.err (!%p2241_p3)
}
  0x27   : > { %s2810_s15 = smov 128   ;;  %s2448_s16 = smov 8  }
  0x28   : > { %s2828_s2 = sld [smem:[#allocation21_spill]]  ;;  %s2256_s12 = scalar_lea.vmem %s347_s13, 2048 }
  0x29   : > { %p2257_p4 = scmp.ne.s32.totalorder %s347_s13, %s2256_s12  ;;  %p2264_p1 = scmp.lt.s32.totalorder %s347_s13, %s347_s13 }
  0x2a   : > { %p2265_p2 = scmp.lt.s32.totalorder %s2256_s12, %s2256_s12 }
  0x2b   : > { %p2259_p10 = pnand %p2257_p4, %p2221_p13 }
  0x2c   : > { %p2266_p3 = por %p2265_p2, %p2264_p1 }
  0x2d   : > { %p2260_p0 = pneg %p2259_p10 }
  0x2e   : > { %2024 = dma.hbm_to_vmem [thread:$0]  (!%p2580_p11), %s2828_s2, 2048, %s328_s28, [#allocation8], %s2810_s15, %s2810_s15, %s2448_s16  }
  0x2f   : > { %p2267_p5 = pnand %p2266_p3, %p2260_p0 }
  0x31   : > { %2270 = shalt.err (!%p2267_p5)
}
  0x32   : > { %s2811_s14 = smov 64   ;;  %s2812_s24 = smov 4  }
  0x33   : > { %s2829_s5 = sld [smem:[#allocation23_spill]]  ;;  %s2451_s17 = smov [#allocation12]  }
  0x34   : > { %s368_s27 = sshll.u32 %s2451_s17, 4  ;;  %s369_s27 = int_to_ptr.vmem [resolvable:$true] %s368_s27 }
  0x35   : > { %s2282_s15 = scalar_lea.vmem %s369_s27, 1024  ;;  %p2290_p10 = scmp.lt.s32.totalorder %s369_s27, %s369_s27 }
  0x36   : > { %p2283_p7 = scmp.ne.s32.totalorder %s369_s27, %s2282_s15  ;;  %p2291_p0 = scmp.lt.s32.totalorder %s2282_s15, %s2282_s15 }
  0x38   : > { %p2285_p9 = pnand %p2283_p7, %p2221_p13  ;;  %p2292_p1 = por %p2291_p0, %p2290_p10 }
  0x39   : > { %2027 = dma.hbm_to_vmem [thread:$0]  (!%p2580_p11), %s2829_s5, 2048, %s347_s13, [#allocation11], %s2811_s14, %s2811_s14, %s2812_s24  }
  0x3a   : > { %p2286_p4 = pneg %p2285_p9 }
  0x3c   : > { %p2293_p2 = pnand %p2292_p1, %p2286_p4 }
  0x3e   : > { %2296 = shalt.err (!%p2293_p2)
}
  0x3f   : > { %s2830_s9 = sld [smem:[#allocation27_spill]]  ;;  %s38_s28 = sadd.s32 1, %s2439_s21 }
  0x40   : > { %s2624_s15 = sand.u32 1, %s2431_s19   ;;  %p39_p13 = scmp.ge.s32.totalorder %s38_s28, 2 }
  0x41   : > { %s1801_s29 = sshll.u32 %s2624_s15, 3  ;;  %s1802_s16 = sshll.u32 %s2439_s21, 6 }
  0x42   : > { %s2856_s28 = smov (%p39_p13, %s38_s28), 0  ;;  %s2832_s0 = sld [smem:[#allocation20_spill]] }
  0x43   : > { %2831 = sst [smem:[#allocation19_spill]] %s2856_s28  ;;  %s46_s12 = ssub.s32 %s2439_s21, %s2856_s28 }
  0x44   : > { %s389_s5 = scalar_lea.vmem [#allocation4], %s1801_s29  ;;  %p2299_p3 = pneg %p2584_p12 }
  0x45   : > { %2030 = dma.hbm_to_vmem [thread:$0]  (!%p2580_p11), %s2830_s9, 1024, %s369_s27, [#allocation11], %s2811_s14, %s2811_s14, %s2812_s24  }
  0x46   : > { %s398_s11 = sshll.u32 %s389_s5, 4  ;;  %p2635_p11 = scmp.eq.s32.totalorder %s46_s12, 0  ;;  %s399_s11 = int_to_ptr.vmem [resolvable:$true] %s398_s11 }
  0x47   : > { %s386_s14 = scalar_lea.sflag [#allocation5], %s2624_s15  ;;  %s2310_s24 = scalar_lea.vmem %s399_s11, 128 }
  0x48   : > { %s397_s13 = scalar_lea.hbm %s2832_s0, %s1802_s16  ;;  %p2311_p5 = scmp.ne.s32.totalorder %s399_s11, %s2310_s24 }
  0x49   : > { %s2452_s2 = smov [#allocation4]  }
  0x4a   : > { %p2313_p7 = pnand %p2311_p5, %p2299_p3  ;;  %s2315_s17 = sshll.u32 %s2452_s2, 4  ;;  %s2316_s17 = int_to_ptr.vmem [resolvable:$false] %s2315_s17 }
  0x4b   : > { %s2317_s16 = scalar_lea.vmem %s2316_s17, 256  ;;  %p2318_p4 = scmp.lt.s32.totalorder %s399_s11, %s2316_s17 }
  0x4c   : > { %p2314_p9 = pneg %p2313_p7  ;;  %p2319_p10 = scmp.lt.s32.totalorder %s2317_s16, %s2310_s24 }
  0x4e   : > { %p2320_p0 = por %p2319_p10, %p2318_p4 }
  0x50   : > { %p2321_p1 = pnand %p2320_p0, %p2314_p9 }
  0x52   : > { %2324 = shalt.err (!%p2321_p1)
}
  0x53   : > { %s2834_s5 = smov 4   ;;  %s2835_s29 = smov 64  }
  0x54   : > { %s2836_s12 = smov 128   ;;  %s2837_s2 = sadd.s32 1, %s2431_s19 }
  0x55   : > { %2034 = dma.hbm_to_vmem [thread:$0]  (!%p2584_p12), %s397_s13, 128, %s399_s11, %s386_s14, %s2836_s12, %s2835_s29, %s2834_s5  }
  0x56   : > { %s2655_s17 = scalar_select %p2635_p11, %s2431_s19, %s2837_s2  }
  0x57   : > { %s408_s24 = sand.u32 1, %s2443_s22   ;;  %s1998_s16 = smul.u32 192, %s2624_s15 }
  0x58   : > { %s1999_s0 = smul.u32 3072, %s2439_s21  ;;  %s409_s6 = scalar_lea.sflag [#allocation8], %s408_s24 }
  0x59   : > { %s412_s8 = scalar_lea.vmem [#allocation7], %s1998_s16  ;;  %s2453_s11 = smov [#allocation7]  }
  0x5a   : > { %s419_s10 = scalar_lea.hbm %s2798_s1, %s1999_s0  ;;  %s420_s7 = sshll.u32 %s412_s8, 4  ;;  %s421_s7 = int_to_ptr.vmem [resolvable:$true] %s420_s7 }
  0x5b   : > { %s2338_s4 = scalar_lea.vmem %s421_s7, 3072  ;;  %s2343_s14 = sshll.u32 %s2453_s11, 4  ;;  %s2344_s14 = int_to_ptr.vmem [resolvable:$false] %s2343_s14 }
  0x5c   : > { %p2339_p2 = scmp.ne.s32.totalorder %s421_s7, %s2338_s4  ;;  %s2345_s13 = scalar_lea.vmem %s2344_s14, 6144 }
  0x5d   : > { %p2346_p11 = scmp.lt.s32.totalorder %s421_s7, %s2344_s14  ;;  %p2347_p7 = scmp.lt.s32.totalorder %s2345_s13, %s2338_s4 }
  0x5e   : > { %p2341_p13 = pnand %p2339_p2, %p2299_p3 }
  0x5f   : > { %p2348_p9 = por %p2347_p7, %p2346_p11 }
  0x60   : > { %p2342_p5 = pneg %p2341_p13 }
  0x62   : > { %p2349_p4 = pnand %p2348_p9, %p2342_p5 }
  0x64   : > { %2352 = shalt.err (!%p2349_p4)
}
  0x65   : > { %s2454_s0 = smov 192   ;;  %s2455_s8 = smov 12  }
  0x66   : > { %2037 = dma.hbm_to_vmem [thread:$0]  (!%p2584_p12), %s419_s10, 3072, %s421_s7, %s409_s6, %s2454_s0, %s2454_s0, %s2455_s8  }
  0x67   : > { %432 = sbr.rel (%p2571_p8) target bundleno = 2359 (0x937), region = 64  ;;  %s434_s9 = sand.u32 (!%p2571_p8), 1, %s2427_s18  }
  0x68   : > { %s1807_s28 = sshll.u32 (!%p2571_p8), %s434_s9, 3  ;;  %s435_s15 = scalar_lea.sflag (!%p2571_p8), [#allocation5], %s434_s9 }
  0x69   : > { %s2671_s27 = scalar_lea.vmem (!%p2571_p8), [#allocation4], %s1807_s28 }
  0x6c   : > { %2402 = dma.done.wait (%p2566_p6), %s435_s15, 128  }
  0x6d   : > { %2404 = vsyncadd (%p2566_p6), %s435_s15, 4294967168  ;;  %s443_s4 = sand.u32 1, %s2555_s23   ;;  %s2000_s30 = smul.u32 192, %s434_s9 }
  0x6e   : > { %s444_s6 = scalar_lea.sflag [#allocation8], %s443_s4 }
  0x6f   : > { %s2678_s7 = scalar_lea.vmem [#allocation7], %s2000_s30 }
  0x70   : > { %2406 = dma.done.wait (%p2566_p6), %s444_s6, 3072  }
  0x71   : > { %2408 = vsyncadd (%p2566_p6), %s444_s6, 4294964224  ;;  %p2838_p8 = scmp.eq.s32.totalorder %s2555_s23, 0 }
  0x73   : > { %2410 = dma.done.wait (%p2838_p8), [#allocation8], 2048   ;;  %p2839_p12 = pmov %p2838_p8 }
  0x74   : > { %p2840_p3 = pmov %p2838_p8 }
  0x75   : > { %2412 = vsyncadd (%p2839_p12), [#allocation8], 4294965248 }
  0x76   : > { %2414 = dma.done.wait (%p2840_p3), [#allocation11], 3072   ;;  %p2841_p10 = pmov %p2840_p3 }
  0x77   : > { %p1811_p0 = scmp.ne.s32.totalorder %s2435_s20, 0 }
  0x78   : > { %2416 = vsyncadd (%p2841_p10), [#allocation11], 4294964224 }
  0x79   : > { %505 = sbr.rel (%p1811_p0) target bundleno = 130 (0x82), region = 88 }
  0x7e   : > { %v2456_v0 = vmov 0.0  }
  0x7f   : > { %506 = vst [vmem:[#allocation2 + $0x28] sm:$0xff] %v2456_v0  ;;  %507 = vst [vmem:[#allocation2 + $0x10] sm:$0xff] %v2456_v0 }
  0x80   : > { %508 = vst [vmem:[#allocation2 + $0x8] sm:$0xff] %v2456_v0  ;;  %509 = vst [vmem:[#allocation2] sm:$0xff] %v2456_v0 }
  0x81   : > { %510 = vst [vmem:[#allocation2 + $0x18] sm:$0xff] %v2456_v0  ;;  %511 = vst [vmem:[#allocation2 + $0x20] sm:$0xff] %v2456_v0 }
  0x82 PF: > { %v2114_v1 = vld [vmem:[%s2678_s7 + $0xac] ss:$12 sps:$4 sm:$0xff]   ;;  %v2457_v2 = vmov 0.0   ;;  %v2116_v3 = vld [vmem:[%s2678_s7 + $0xb0] ss:$12 sps:$4 sm:$0xff]   ;;  %vm2458_vm0 = vmmov 0  }
  0x83   : > { %1938 = vmatprep.subr.bf16.mxu1 %v2457_v2  ;;  %1954 = vmatprep.mubr.msk.bf16.mxu1 %vm2458_vm0, %v2457_v2  ;;  %v2117_v4 = vld [vmem:[%s2678_s7 + $0xa8] ss:$12 sps:$4 sm:$0xff]   ;;  %v2459_v6 = vmov 0   ;;  %v2120_v7 = vld [vmem:[%s2678_s7 + $0x98] ss:$12 sps:$4 sm:$0xff]   ;;  %s1837_s10 = sshll.u32 %s2435_s20, 7 }
  0x84   : > { %686 = vmatprep.subr.bf16.mxu0 %v2114_v1  ;;  %1939 = vmatpush3.bf16.msra.mxu1 %v2116_v3  ;;  %v2118_v5 = vld [vmem:[%s2678_s7 + $0x94] ss:$12 sps:$4 sm:$0xff]   ;;  %v2121_v8 = vld [vmem:[%s2678_s7 + $0x90] ss:$12 sps:$4 sm:$0xff]   ;;  %v2125_v11 = vld [vmem:[%s2678_s7 + $0x78] ss:$12 sps:$4 sm:$0xff]  }
  0x85   : > { %718 = vmatprep.mubr.bf16.mxu0 %v2459_v6  ;;  %687 = vmatpush1.bf16.msra.mxu0 %v2117_v4  ;;  %v2122_v9 = vld [vmem:[%s2678_s7 + $0x7c] ss:$12 sps:$4 sm:$0xff]   ;;  %v2124_v10 = vld [vmem:[%s2678_s7 + $0x80] ss:$12 sps:$4 sm:$0xff]   ;;  %v2126_v12 = vld [vmem:[%s2678_s7 + $0x64] ss:$12 sps:$4 sm:$0xff]  }
  0x86   : > { %1940 = vmatprep.subr.bf16.mxu1 %v2457_v2  ;;  %688 = vmatprep.subr.bf16.mxu0 %v2118_v5  ;;  %s783_s25 = sshra.s32 %s1837_s10, 7  ;;  %v2128_v13 = vld [vmem:[%s2678_s7 + $0x68] ss:$12 sps:$4 sm:$0xff]   ;;  %v2129_v14 = vld [vmem:[%s2678_s7 + $0x60] ss:$12 sps:$4 sm:$0xff]   ;;  %v514_v31 = vld [vmem:[#allocation2 + $0x28] sm:$0xff] }
  0x87   : > { %v2130_v15 = vld [vmem:[%s2678_s7 + $0x4c] ss:$12 sps:$4 sm:$0xff]   ;;  %s1838_s26 = sshll.u32 %s783_s25, 2  ;;  %v2132_v16 = vld [vmem:[%s2678_s7 + $0x50] ss:$12 sps:$4 sm:$0xff]   ;;  %v515_v35 = vld [vmem:[#allocation2 + $0x10] sm:$0xff] }
  0x88   : > { %1941 = vmatpush3.bf16.msra.mxu1 %v2120_v7  ;;  %v2133_v17 = vld [vmem:[%s2678_s7 + $0x48] ss:$12 sps:$4 sm:$0xff]   ;;  %v512_v19 = vld [vmem:[%s2671_s27] sm:$0xf]  ;;  %s786_s5 = scalar_lea.vmem [#allocation3], %s1838_s26  ;;  %p1839_p6 = scmp.ne.s32.totalorder %s2435_s20, 1 }
  0x89   : > { %689 = vmatpush1.bf16.msra.mxu0 %v2121_v8  ;;  %1942 = vmatprep.subr.bf16.mxu1 %v2457_v2  ;;  %v2134_v18 = vld [vmem:[%s2678_s7 + $0x34] ss:$12 sps:$4 sm:$0xff]   ;;  %v2136_v20 = vld [vmem:[%s2678_s7 + $0x38] ss:$12 sps:$4 sm:$0xff]   ;;  %787 = vst [vmem:[%s786_s5] sm:$0xf] %v512_v19  ;;  %v518_v45 = vld [vmem:[#allocation2 + $0x18] sm:$0xff] }
  0x8a   : > { %690 = vmatprep.subr.bf16.mxu0 %v2122_v9  ;;  %v513_v21 = vld [vmem:[%s2671_s27 + $0x4] sm:$0xf]  ;;  %v2140_v24 = vld [vmem:[%s2678_s7 + $0x20] ss:$12 sps:$4 sm:$0xff]   ;;  %v2141_v25 = vld [vmem:[%s2678_s7 + $0x18] ss:$12 sps:$4 sm:$0xff]  }
  0x8b   : > { %v2137_v22 = vld [vmem:[%s2678_s7 + $0x30] ss:$12 sps:$4 sm:$0xff]   ;;  %788 = vst [vmem:[%s786_s5 + $0x8] sm:$0xf] %v513_v21  ;;  %v2144_v27 = vld [vmem:[%s2678_s7 + $0x8] ss:$12 sps:$4 sm:$0xff]   ;;  %v1812_v29 = vcombine.low %v512_v19, %v513_v21 }
  0x8c   : > { %1943 = vmatpush3.bf16.msra.mxu1 %v2124_v10  ;;  %v2138_v23 = vld [vmem:[%s2678_s7 + $0x1c] ss:$12 sps:$4 sm:$0xff]   ;;  %v2142_v26 = vld [vmem:[%s2678_s7 + $0x4] ss:$12 sps:$4 sm:$0xff]   ;;  %v2145_v28 = vld [vmem:[%s2678_s7] ss:$12 sps:$4 sm:$0xff]  }
  0x8d   : > { %691 = vmatpush1.bf16.msra.mxu0 %v2125_v11  ;;  %1944 = vmatprep.subr.bf16.mxu1 %v2457_v2  ;;  %v516_v30 = vld [vmem:[#allocation2 + $0x8] sm:$0xff]  ;;  %v519_v38 = vld [vmem:[#allocation2 + $0x20] sm:$0xff]  ;;  %s2842_s24 = sld [smem:[#allocation22_spill]] (!%p1839_p6) }
  0x8e   : > { %692 = vmatprep.subr.bf16.mxu0 %v2126_v12  ;;  %v517_v40 = vld [vmem:[#allocation2] sm:$0xff]  ;;  %s2843_s14 = sld [smem:[#allocation24_spill]] (!%p1839_p6) }
  0x8f   : > { %s2844_s8 = sld [smem:[#allocation25_spill]] (!%p1839_p6) }
  0x90   : > { %1945 = vmatpush3.bf16.msra.mxu1 %v2128_v13  ;;  %s2845_s15 = sld [smem:[#allocation26_spill]] (!%p1839_p6) }
  0x91   : > { %693 = vmatpush1.bf16.msra.mxu0 %v2129_v14  ;;  %1946 = vmatprep.subr.bf16.mxu1 %v2457_v2  ;;  %s2846_s30 = sld [smem:[#allocation28_spill]] (!%p1839_p6) }
  0x92   : > { %694 = vmatprep.subr.bf16.mxu0 %v2130_v15 }
  0x94   : > { %1947 = vmatpush3.bf16.msra.mxu1 %v2132_v16 }
  0x95   : > { %695 = vmatpush1.bf16.msra.mxu0 %v2133_v17  ;;  %1948 = vmatprep.subr.bf16.mxu1 %v2457_v2 }
  0x96   : > { %696 = vmatprep.subr.bf16.mxu0 %v2134_v18 }
  0x98   : > { %1949 = vmatpush3.bf16.msra.mxu1 %v2136_v20 }
  0x99   : > { %697 = vmatpush1.bf16.msra.mxu0 %v2137_v22  ;;  %1950 = vmatprep.subr.bf16.mxu1 %v2457_v2 }
  0x9a   : > { %698 = vmatprep.subr.bf16.mxu0 %v2138_v23 }
  0x9c   : > { %1951 = vmatpush3.bf16.msra.mxu1 %v2140_v24 }
  0x9d   : > { %699 = vmatpush1.bf16.msra.mxu0 %v2141_v25  ;;  %1952 = vmatprep.subr.bf16.mxu1 %v2457_v2 }
  0x9e   : > { %700 = vmatprep.subr.bf16.mxu0 %v2142_v26 }
  0xa0   : > { %1953 = vmatpush3.bf16.msra.mxu1 %v2144_v27 }
  0xa1   : > { %701 = vmatpush1.bf16.msra.mxu0 %v2145_v28 }
  0xa3   : > { %1955 = vmatmul.mubr.bf16.vlgmr.msra.gmra.mxu1 %v1812_v29 }
  0xa4   : > { %719 = vmatmul.mubr.bf16.vlgmr.msra.gmra.mxu0 %v1812_v29 }
 0x163   : > { %v763_v32 = vpop.f32.mrf.mxu1 }
 0x164   : > { %v772_v33 = vadd.f32 %v763_v32, %v516_v30  ;;  %v720_v34 = vpop.f32.mrf.mxu0 }
 0x165   : > { %v770_v36 = vadd.f32 %v720_v34, %v514_v31  ;;  %v1956_v37 = vpop.f32.mrf.mxu1 }
 0x166   : > { %778 = vst [vmem:[#allocation2 + $0x8] sm:$0xff] %v772_v33  ;;  %v722_v39 = vpop.f32.mrf.mxu0 }
 0x167   : > { %776 = vst [vmem:[#allocation2 + $0x28] sm:$0xff] %v770_v36  ;;  %v771_v41 = vadd.f32 %v722_v39, %v515_v35  ;;  %v766_v42 = vpop.f32.mrf.mxu1 }
 0x168   : > { %v775_v43 = vadd.f32 %v766_v42, %v519_v38  ;;  %v724_v44 = vpop.f32.mrf.mxu0 }
 0x169   : > { %777 = vst [vmem:[#allocation2 + $0x10] sm:$0xff] %v771_v41  ;;  %v773_v46 = vadd.f32 %v724_v44, %v517_v40  ;;  %v1957_v47 = vpop.f32.mrf.mxu1  ;;  %792 = sbr.rel (%p1839_p6) target bundleno = 2337 (0x921), region = 92 }
 0x16a   : > { %781 = vst [vmem:[#allocation2 + $0x20] sm:$0xff] %v775_v43  ;;  %v726_v48 = vpop.f32.mrf.mxu0 }
 0x16b   : > { %779 = vst [vmem:[#allocation2] sm:$0xff] %v773_v46  ;;  %v774_v49 = vadd.f32 %v726_v48, %v518_v45 }
 0x16d   : > { %780 = vst [vmem:[#allocation2 + $0x18] sm:$0xff] %v774_v49 }
 0x16e   : > { %v793_v51 = vld [vmem:[#allocation2 + $0x28] sm:$0xff]  ;;  %v2460_v52 = vmov 0.0   ;;  %vm2461_vm1 = vmmov 0   ;;  %vm939_vm2 = vcmask 64512   ;;  %v2150_v10 = vld [vmem:[#allocation9 + $0x64] ss:$8 sps:$4 sm:$0xff]  }
 0x16f   : > { %1958 = vmatprep.subr.mxu1 %v2460_v52  ;;  %1960 = vmatprep.mubr.msk.f32.mxu1 %vm2461_vm1, %v2460_v52  ;;  %v795_v7 = vld [vmem:[#allocation2 + $0x8] sm:$0xff]  ;;  %v2152_v11 = vld [vmem:[#allocation9 + $0x60] ss:$8 sps:$4 sm:$0xff]   ;;  %v2156_v14 = vld [vmem:[#allocation9 + $0x44] ss:$8 sps:$4 sm:$0xff]   ;;  %v2462_v31 = vmov 0  }
 0x170   : > { %v794_v50 = vld [vmem:[#allocation2 + $0x10] sm:$0xff]  ;;  %v2147_v8 = vld [vmem:[#allocation9 + $0x74] ss:$8 sps:$4 sm:$0xff]   ;;  %v2149_v9 = vld [vmem:[#allocation9 + $0x70] ss:$8 sps:$4 sm:$0xff]   ;;  %1243 = vmatprep.mubr.bf16.mxu0 %v2462_v31 }
 0x171   : > { %1959 = vmatpush3.xpose.msra.mxu1 %v794_v50  ;;  %1211 = vmatprep.subr.bf16.mxu0 %v2147_v8  ;;  %v2153_v12 = vld [vmem:[#allocation9 + $0x54] ss:$8 sps:$4 sm:$0xff]   ;;  %v2155_v13 = vld [vmem:[#allocation9 + $0x50] ss:$8 sps:$4 sm:$0xff]   ;;  %v2158_v15 = vld [vmem:[#allocation9 + $0x40] ss:$8 sps:$4 sm:$0xff]  }
 0x172   : > { %1963 = vmatprep.subr.mxu1 %v2460_v52  ;;  %v796_v54 = vld [vmem:[#allocation2] sm:$0xff]  ;;  %1212 = vmatpush1.bf16.msra.mxu0 %v2149_v9  ;;  %v2162_v18 = vld [vmem:[#allocation9 + $0x24] ss:$8 sps:$4 sm:$0xff]   ;;  %v2164_v19 = vld [vmem:[#allocation9 + $0x20] ss:$8 sps:$4 sm:$0xff]  }
 0x173   : > { %1213 = vmatprep.subr.bf16.mxu0 %v2150_v10  ;;  %v2159_v16 = vld [vmem:[#allocation9 + $0x34] ss:$8 sps:$4 sm:$0xff]   ;;  %v2161_v17 = vld [vmem:[#allocation9 + $0x30] ss:$8 sps:$4 sm:$0xff]   ;;  %v2168_v29 = vld [vmem:[#allocation9 + $0x4] ss:$8 sps:$4 sm:$0xff]  }
 0x174   : > { %v797_v53 = vld [vmem:[#allocation2 + $0x18] sm:$0xff]  ;;  %1961 = vmatmul.mubr.f32.vlgmr.msra.gmra.mxu1 %v793_v51  ;;  %v2165_v20 = vld [vmem:[#allocation9 + $0x14] ss:$8 sps:$4 sm:$0xff]   ;;  %v2167_v28 = vld [vmem:[#allocation9 + $0x10] ss:$8 sps:$4 sm:$0xff]  }
 0x175   : > { %1964 = vmatpush3.xpose.msra.mxu1 %v797_v53  ;;  %1965 = vmatprep.mubr.msk.f32.mxu1 %vm2461_vm1, %v2460_v52  ;;  %v798_v25 = vld [vmem:[#allocation2 + $0x20] sm:$0xff]  ;;  %v2170_v30 = vld [vmem:[#allocation9] ss:$8 sps:$4 sm:$0xff]  }
 0x176   : > { %1968 = vmatprep.subr.mxu1 %v2460_v52  ;;  %1214 = vmatpush1.bf16.msra.mxu0 %v2152_v11  ;;  %v1125_v37 = vld [vmem:[#allocation3] sm:$0xff]  ;;  %v1126_v41 = vld [vmem:[#allocation3 + $0x8] sm:$0xff] }
 0x177   : > { %1215 = vmatprep.subr.bf16.mxu0 %v2153_v12  ;;  %v1127_v38 = vunpack.c.l.bf16 %v1125_v37  ;;  %v1128_v39 = vunpack.c.h.bf16 %v1125_v37  ;;  %v1129_v45 = vunpack.c.l.bf16 %v1126_v41  ;;  %v1130_v46 = vunpack.c.h.bf16 %v1126_v41  ;;  %v2175_v8 = vld [vmem:[#allocation10 + $0x68] sm:$0xff]   ;;  %v2177_v10 = vld [vmem:[#allocation10 + $0x60] sm:$0xff]   ;;  %v2179_v12 = vld [vmem:[#allocation10 + $0x58] sm:$0xff]  }
 0x178   : > { %1966 = vmatmul.mubr.f32.vlgmr.msra.gmra.mxu1 %v796_v54  ;;  %v2171_v54 = vld [vmem:[#allocation10 + $0x78] sm:$0xff]   ;;  %v2176_v9 = vld [vmem:[#allocation10 + $0x28] sm:$0xff]   ;;  %v2178_v11 = vld [vmem:[#allocation10 + $0x20] sm:$0xff]  }
 0x179   : > { %1970 = vmatprep.mubr.msk.f32.mxu1 %vm2461_vm1, %v2460_v52  ;;  %1969 = vmatpush3.msra.mxu1 %v795_v7  ;;  %v2174_v7 = vld [vmem:[#allocation10 + $0x30] sm:$0xff]  }
 0x17a   : > { %1973 = vmatprep.subr.mxu1 %v2460_v52  ;;  %1216 = vmatpush1.bf16.msra.mxu0 %v2155_v13  ;;  %v2180_v13 = vld [vmem:[#allocation10 + $0x18] sm:$0xff]  }
 0x17b   : > { %1217 = vmatprep.subr.bf16.mxu0 %v2156_v14  ;;  %v2181_v14 = vld [vmem:[#allocation10 + $0x50] sm:$0xff]  }
 0x17e   : > { %1218 = vmatpush1.bf16.msra.mxu0 %v2158_v15  ;;  %v2182_v15 = vld [vmem:[#allocation10 + $0x10] sm:$0xff]  }
 0x17f   : > { %1219 = vmatprep.subr.bf16.mxu0 %v2159_v16  ;;  %v2183_v16 = vld [vmem:[#allocation10 + $0x48] sm:$0xff]  }
 0x182   : > { %1220 = vmatpush1.bf16.msra.mxu0 %v2161_v17  ;;  %v2184_v17 = vld [vmem:[#allocation10 + $0x8] sm:$0xff]  }
 0x183   : > { %1221 = vmatprep.subr.bf16.mxu0 %v2162_v18  ;;  %v2185_v18 = vld [vmem:[#allocation10 + $0x40] sm:$0xff]  }
 0x186   : > { %1222 = vmatpush1.bf16.msra.mxu0 %v2164_v19  ;;  %v2186_v19 = vld [vmem:[#allocation10] sm:$0xff]  }
 0x187   : > { %1223 = vmatprep.subr.bf16.mxu0 %v2165_v20 }
 0x18a   : > { %1224 = vmatpush1.bf16.msra.mxu0 %v2167_v28 }
 0x18b   : > { %1225 = vmatprep.subr.bf16.mxu0 %v2168_v29 }
 0x18e   : > { %1226 = vmatpush1.bf16.msra.mxu0 %v2170_v30  ;;  %v1254_v30 = vld [vmem:[%s2800_s3] sm:$0x3] }
 0x18f   : > { %1978 = vmatprep.subr.bf16.mxu0 %v2460_v52 }
 0x234   : > { %v865_v55 = vpop.f32.mrf.mxu1 }
 0x235   : > { %v940_v56 = vsel %vm939_vm2, %v865_v55, -inf }
 0x236   : > { %941 = vmax.xlane.f32.xlu0 %v940_v56  ;;  %v1962_v57 = vpop.f32.mrf.mxu1 }
 0x238   : > { %v935_v58 = vpop.f32.mrf.mxu1 }
 0x239   : > { %v943_v59 = vsel %vm939_vm2, %v935_v58, -inf }
 0x23a   : > { %944 = vmax.xlane.f32.xlu0 %v943_v59  ;;  %v1967_v60 = vpop.f32.mrf.mxu1 }
 0x2bf   : > { %v942_v61 = vpop.xlane.xlu0 %941 }
 0x2c0   : > { %v946_v62 = vsub.f32 %v865_v55, %v942_v61 }
 0x2c2   : > { %v948_v63 = vmul.f32 1.442695, %v946_v62 }
 0x2c3   : > { %v945_v0 = vpop.xlane.xlu0 %944 }
 0x2c4   : > { %2195 = vpow2.f32 %v948_v63  ;;  %v947_v1 = vsub.f32 %v935_v58, %v945_v0 }
 0x2c6   : > { %v950_v2 = vmul.f32 1.442695, %v947_v1 }
 0x2c8   : > { %2197 = vpow2.f32 %v950_v2 }
 0x2d1   : > { %v2196_v3 = vpop.eup %2195 }
 0x2d2   : > { %v952_v4 = vsel %vm939_vm2, %v2196_v3, 0.0 }
 0x2d3   : > { %953 = vadd.xlane.f32.xlu1 %v952_v4 }
 0x2d5   : > { %v2198_v5 = vpop.eup %2197 }
 0x2d6   : > { %v955_v6 = vsel %vm939_vm2, %v2198_v5, 0.0 }
 0x2d7   : > { %956 = vadd.xlane.f32.xlu1 %v955_v6  ;;  %v2173_v6 = vld [vmem:[#allocation10 + $0x70] sm:$0xff]  }
 0x35c   : > { %v954_v21 = vpop.xlane.xlu1 %953 }
 0x35d   : > { %2199 = vrcp.f32 %v954_v21 }
 0x360   : > { %v957_v22 = vpop.xlane.xlu1 %956 }
 0x361   : > { %2201 = vrcp.f32 %v957_v22 }
 0x36a   : > { %v2200_v23 = vpop.eup %2199 }
 0x36b   : > { %v960_v24 = vmul.f32 %v2200_v23, %v2196_v3 }
 0x36d   : > { %1971 = vmatmul.mubr.msk.f32.vlgmr.msra.gmra.mxu1 %vm939_vm2, %v960_v24 }
 0x36e   : > { %v2202_v26 = vpop.eup %2201  ;;  %1974 = vmatpush3.msra.mxu1 %v798_v25  ;;  %1975 = vmatprep.mubr.msk.f32.mxu1 %vm2461_vm1, %v2460_v52 }
 0x36f   : > { %v961_v27 = vmul.f32 %v2202_v26, %v2198_v5  ;;  %1907 = vmatprep.subr.bf16.mxu1 %v2171_v54  ;;  %v2172_v5 = vld [vmem:[#allocation10 + $0x38] sm:$0xff]   ;;  %v1290_v26 = vlaneseq }
 0x371   : > { %1976 = vmatmul.mubr.msk.f32.vlgmr.msra.gmra.mxu1 %vm939_vm2, %v961_v27  ;;  %v1291_v27 = vshrl.u32 %v1290_v26, 7 }
 0x372   : > { %1908 = vmatpush3.bf16.msra.mxu1 %v2172_v5 }
 0x373   : > { %1909 = vmatprep.subr.bf16.mxu1 %v2173_v6  ;;  %v1292_v28 = vsub.s32 0, %v1291_v27  ;;  %v1296_v29 = vsub.s32 1, %v1291_v27 }
 0x376   : > { %1910 = vmatpush3.bf16.msra.mxu1 %v2174_v7 }
 0x377   : > { %1911 = vmatprep.subr.bf16.mxu1 %v2175_v8 }
 0x37a   : > { %1912 = vmatpush3.bf16.msra.mxu1 %v2176_v9  ;;  %v2188_v9 = vld [vmem:[#allocation12 + $0x30] sm:$0xff]  }
 0x37b   : > { %1913 = vmatprep.subr.bf16.mxu1 %v2177_v10  ;;  %v2189_v10 = vld [vmem:[#allocation12 + $0x28] sm:$0xff]  }
 0x37e   : > { %1914 = vmatpush3.bf16.msra.mxu1 %v2178_v11  ;;  %v2190_v11 = vld [vmem:[#allocation12 + $0x20] sm:$0xff]  }
 0x37f   : > { %1915 = vmatprep.subr.bf16.mxu1 %v2179_v12  ;;  %v2191_v12 = vld [vmem:[#allocation12 + $0x18] sm:$0xff]  }
 0x382   : > { %1916 = vmatpush3.bf16.msra.mxu1 %v2180_v13  ;;  %v2192_v13 = vld [vmem:[#allocation12 + $0x10] sm:$0xff]  }
 0x383   : > { %1917 = vmatprep.subr.bf16.mxu1 %v2181_v14  ;;  %v2193_v14 = vld [vmem:[#allocation12 + $0x8] sm:$0xff]  }
 0x386   : > { %1918 = vmatpush3.bf16.msra.mxu1 %v2182_v15  ;;  %v2194_v15 = vld [vmem:[#allocation12] sm:$0xff]  }
 0x387   : > { %1919 = vmatprep.subr.bf16.mxu1 %v2183_v16 }
 0x38a   : > { %1920 = vmatpush3.bf16.msra.mxu1 %v2184_v17 }
 0x38b   : > { %1921 = vmatprep.subr.bf16.mxu1 %v2185_v18 }
 0x38e   : > { %1922 = vmatpush3.bf16.msra.mxu1 %v2186_v19 }
 0x42d   : > { %v1031_v32 = vpop.f32.mrf.mxu1 }
 0x42f   : > { %v1972_v33 = vpop.f32.mrf.mxu1 }
 0x431   : > { %v1104_v34 = vpop.f32.mrf.mxu1 }
 0x432   : > { %v1108_v35 = vpack.c.bf16 %v1104_v34, %v1031_v32  ;;  %v1255_v32 = vld [vmem:[%s2842_s24] sm:$0x3]  ;;  %v1293_v34 = vrot.slane %v1254_v30, %v1292_v28 }
 0x433   : > { %v1977_v36 = vpop.f32.mrf.mxu1 }
 0x434   : > { %1244 = vmatmul.mubr.bf16.vlgmr.msra.gmra.mxu0 %v1108_v35  ;;  %v1297_v35 = vrot.slane %v1254_v30, %v1296_v29 }
 0x435   : > { %1994 = vmatprep.mubr.msk.bf16.mxu0 %vm2461_vm1, %v2460_v52 }
 0x4f4   : > { %v1245_v40 = vpop.f32.mrf.mxu0 }
 0x4f5   : > { %v1246_v43 = vadd.f32 %v1245_v40, %v1127_v38  ;;  %v1308_v38 = vrot.slane %v1255_v32, %v1292_v28 }
 0x4f6   : > { %v1247_v42 = vpop.f32.mrf.mxu0 }
 0x4f7   : > { %v1248_v44 = vadd.f32 %v1247_v42, %v1128_v39  ;;  %v1312_v39 = vrot.slane %v1255_v32, %v1296_v29  ;;  %v1877_v32 = vld [vmem:[%s2846_s30] ss:$0 sm:$0xff] }
 0x4f8   : > { %v1249_v47 = vpop.f32.mrf.mxu0 }
 0x4f9   : > { %v1256_v48 = vadd.f32 %v1248_v44, %v1246_v43  ;;  %v1250_v50 = vadd.f32 %v1249_v47, %v1129_v45 }
 0x4fa   : > { %v1251_v49 = vpop.f32.mrf.mxu0 }
 0x4fb   : > { %v1252_v51 = vadd.f32 %v1251_v49, %v1130_v46  ;;  %1257 = vadd.xlane.f32.xlu0 %v1256_v48 }
 0x4fd   : > { %v1259_v53 = vadd.f32 %v1252_v51, %v1250_v50 }
 0x4ff   : > { %1260 = vadd.xlane.f32.xlu1 %v1259_v53 }
 0x584   : > { %v1258_v55 = vpop.xlane.xlu0 %1257 }
 0x585   : > { %v1263_v56 = vmul.f32 0.00390625, %v1258_v55  ;;  %v1858_v55 = vld [vmem:[%s2843_s14] ss:$0 sm:$0xff] }
 0x587   : > { %v1265_v57 = vsub.f32 %v1246_v43, %v1263_v56  ;;  %v1266_v58 = vsub.f32 %v1248_v44, %v1263_v56 }
 0x588   : > { %v1261_v59 = vpop.xlane.xlu1 %1260 }
 0x589   : > { %v1264_v60 = vmul.f32 0.00390625, %v1261_v59  ;;  %v1269_v61 = vmul.f32 %v1265_v57, %v1265_v57  ;;  %v1270_v62 = vmul.f32 %v1266_v58, %v1266_v58 }
 0x58b   : > { %v1267_v63 = vsub.f32 %v1250_v50, %v1264_v60  ;;  %v1268_v0 = vsub.f32 %v1252_v51, %v1264_v60  ;;  %v1273_v1 = vadd.f32 %v1270_v62, %v1269_v61 }
 0x58d   : > { %1274 = vadd.xlane.f32.xlu0 %v1273_v1  ;;  %v1271_v2 = vmul.f32 %v1267_v63, %v1267_v63  ;;  %v1272_v3 = vmul.f32 %v1268_v0, %v1268_v0 }
 0x58f   : > { %v1276_v4 = vadd.f32 %v1272_v3, %v1271_v2 }
 0x591   : > { %1277 = vadd.xlane.f32.xlu1 %v1276_v4 }
 0x616   : > { %v1275_v20 = vpop.xlane.xlu0 %1274 }
 0x617   : > { %v1279_v21 = vmul.f32 0.00390625, %v1275_v20 }
 0x619   : > { %v1281_v22 = vadd.f32 1e-05, %v1279_v21 }
 0x61a   : > { %v1278_v23 = vpop.xlane.xlu1 %1277 }
 0x61b   : > { %2203 = vrsqrt.f32 %v1281_v22  ;;  %v1280_v24 = vmul.f32 0.00390625, %v1278_v23 }
 0x61d   : > { %v1282_v25 = vadd.f32 1e-05, %v1280_v24  ;;  %v1875_v24 = vld [vmem:[%s2844_s8] ss:$0 sm:$0xff] }
 0x61f   : > { %2205 = vrsqrt.f32 %v1282_v25 }
 0x628   : > { %v2204_v31 = vpop.eup %2203 }
 0x629   : > { %v1286_v33 = vmul.f32 %v2204_v31, %v1266_v58  ;;  %v1285_v36 = vmul.f32 %v2204_v31, %v1265_v57 }
 0x62b   : > { %v1301_v41 = vmul.f32 %v1297_v35, %v1286_v33  ;;  %v1300_v43 = vmul.f32 %v1293_v34, %v1285_v36 }
 0x62c   : > { %v2206_v37 = vpop.eup %2205 }
 0x62d   : > { %v1288_v40 = vmul.f32 %v2206_v37, %v1268_v0  ;;  %v1287_v42 = vmul.f32 %v2206_v37, %v1267_v63  ;;  %v1316_v46 = vadd.f32 %v1312_v39, %v1301_v41  ;;  %v1315_v48 = vadd.f32 %v1308_v38, %v1300_v43  ;;  %v2187_v0 = vld [vmem:[#allocation12 + $0x38] sm:$0xff]  }
 0x62e   : > { %1979 = vmatpush3.bf16.msra.mxu0 %v2187_v0 }
 0x62f   : > { %v1303_v44 = vmul.f32 %v1297_v35, %v1288_v40  ;;  %v1302_v45 = vmul.f32 %v1293_v34, %v1287_v42  ;;  %1980 = vmatprep.subr.bf16.mxu0 %v2460_v52 }
 0x631   : > { %v1318_v47 = vadd.f32 %v1312_v39, %v1303_v44  ;;  %v1317_v49 = vadd.f32 %v1308_v38, %v1302_v45 }
 0x632   : > { %1981 = vmatpush3.bf16.msra.mxu0 %v2188_v9 }
 0x633   : > { %v1320_v50 = vpack.c.bf16 %v1318_v47, %v1316_v46  ;;  %v1319_v51 = vpack.c.bf16 %v1317_v49, %v1315_v48  ;;  %1982 = vmatprep.subr.bf16.mxu0 %v2460_v52 }
 0x635   : > { %1488 = vmatprep.mubr.bf16.mxu1 %v1320_v50 }
 0x636   : > { %1489 = vmatmul.mubr.bf16.vlgmr.msra.gmra.mxu1 %v1319_v51  ;;  %1983 = vmatpush3.bf16.msra.mxu0 %v2189_v10 }
 0x637   : > { %1984 = vmatprep.subr.bf16.mxu0 %v2460_v52 }
 0x63a   : > { %1985 = vmatpush3.bf16.msra.mxu0 %v2190_v11 }
 0x63b   : > { %1986 = vmatprep.subr.bf16.mxu0 %v2460_v52 }
 0x63e   : > { %1987 = vmatpush3.bf16.msra.mxu0 %v2191_v12 }
 0x63f   : > { %1988 = vmatprep.subr.bf16.mxu0 %v2460_v52 }
 0x642   : > { %1989 = vmatpush3.bf16.msra.mxu0 %v2192_v13 }
 0x643   : > { %1990 = vmatprep.subr.bf16.mxu0 %v2460_v52 }
 0x646   : > { %1991 = vmatpush3.bf16.msra.mxu0 %v2193_v14 }
 0x647   : > { %1992 = vmatprep.subr.bf16.mxu0 %v2460_v52  ;;  %v1876_v52 = vld [vmem:[%s2845_s15] ss:$0 sm:$0xff] }
 0x64a   : > { %1993 = vmatpush3.bf16.msra.mxu0 %v2194_v15 }
 0x6f6   : > { %v1923_v53 = vpop.f32.mrf.mxu1 }
 0x6f8   : > { %v1924_v54 = vpop.f32.mrf.mxu1 }
 0x6f9   : > { %v1925_v56 = vadd.f32 %v1924_v54, %v1923_v53 }
 0x6fa   : > { %v1926_v57 = vpop.f32.mrf.mxu1 }
 0x6fb   : > { %v1491_v58 = vadd.f32 %v1925_v56, %v1858_v55 }
 0x6fc   : > { %v1927_v59 = vpop.f32.mrf.mxu1 }
 0x6fd   : > { %v1928_v60 = vadd.f32 %v1927_v59, %v1926_v57  ;;  %v1497_v61 = vmax.f32 %v1491_v58, 0.0 }
 0x6ff   : > { %1501 = vadd.xlane.f32.xlu0 %v1497_v61  ;;  %v1494_v62 = vadd.f32 %v1928_v60, %v1858_v55 }
 0x701   : > { %v1498_v63 = vmax.f32 %v1494_v62, 0.0 }
 0x703   : > { %1503 = vadd.xlane.f32.xlu1 %v1498_v63 }
 0x788   : > { %v1502_v1 = vpop.xlane.xlu0 %1501 }
 0x789   : > { %v1506_v2 = vmul.f32 0.0078125, %v1502_v1 }
 0x78b   : > { %v1508_v3 = vsub.f32 %v1497_v61, %v1506_v2 }
 0x78c   : > { %v1504_v4 = vpop.xlane.xlu1 %1503 }
 0x78d   : > { %v1507_v5 = vmul.f32 0.0078125, %v1504_v4  ;;  %v1510_v6 = vmul.f32 %v1508_v3, %v1508_v3 }
 0x78f   : > { %v1509_v7 = vsub.f32 %v1498_v63, %v1507_v5  ;;  %1512 = vadd.xlane.f32.xlu0 %v1510_v6 }
 0x791   : > { %v1511_v8 = vmul.f32 %v1509_v7, %v1509_v7 }
 0x793   : > { %1514 = vadd.xlane.f32.xlu1 %v1511_v8 }
 0x818   : > { %v1513_v16 = vpop.xlane.xlu0 %1512 }
 0x819   : > { %v1516_v17 = vmul.f32 0.0078125, %v1513_v16 }
 0x81b   : > { %v1518_v18 = vadd.f32 1e-05, %v1516_v17 }
 0x81c   : > { %v1515_v19 = vpop.xlane.xlu1 %1514 }
 0x81d   : > { %2207 = vrsqrt.f32 %v1518_v18  ;;  %v1517_v20 = vmul.f32 0.0078125, %v1515_v19 }
 0x81f   : > { %v1519_v21 = vadd.f32 1e-05, %v1517_v20 }
 0x821   : > { %2209 = vrsqrt.f32 %v1519_v21 }
 0x82a   : > { %v2208_v22 = vpop.eup %2207 }
 0x82b   : > { %v1522_v23 = vmul.f32 %v2208_v22, %v1508_v3 }
 0x82d   : > { %v1530_v27 = vmul.f32 %v1875_v24, %v1522_v23 }
 0x82e   : > { %v2210_v25 = vpop.eup %2209 }
 0x82f   : > { %v1523_v26 = vmul.f32 %v2210_v25, %v1509_v7  ;;  %v1538_v29 = vadd.f32 %v1876_v52, %v1530_v27 }
 0x831   : > { %v1531_v28 = vmul.f32 %v1875_v24, %v1523_v26 }
 0x833   : > { %v1539_v30 = vadd.f32 %v1876_v52, %v1531_v28 }
 0x835   : > { %v1540_v31 = vpack.c.bf16 %v1539_v30, %v1538_v29 }
 0x837   : > { %1995 = vmatmul.mubr.bf16.vlgmr.msra.gmra.mxu0 %v1540_v31 }
 0x8f7   : > { %v1646_v33 = vpop.f32.mrf.mxu0 }
 0x8f8   : > { %v1647_v34 = vadd.f32 %v1877_v32, %v1646_v33 }
 0x8f9   : > { %v1996_v35 = vpop.f32.mrf.mxu0 }
 0x8fa   : > { %v1653_v36 = vsub.f32 0.0, %v1647_v34 }
 0x8fb   : > { %v1649_v37 = vpop.f32.mrf.mxu0 }
 0x8fc   : > { %v1655_v38 = vmul.f32 1.442695, %v1653_v36  ;;  %v1650_v39 = vadd.f32 %v1877_v32, %v1649_v37 }
 0x8fd   : > { %v1997_v40 = vpop.f32.mrf.mxu0 }
 0x8fe   : > { %2211 = vpow2.f32 %v1655_v38  ;;  %v1654_v41 = vsub.f32 0.0, %v1650_v39 }
 0x900   : > { %v1657_v42 = vmul.f32 1.442695, %v1654_v41 }
 0x902   : > { %2213 = vpow2.f32 %v1657_v42 }
 0x90b   : > { %v2212_v43 = vpop.eup %2211 }
 0x90c   : > { %v1659_v44 = vadd.f32 1.0, %v2212_v43 }
 0x90e   : > { %2215 = vrcp.f32 %v1659_v44 }
 0x90f   : > { %v2214_v45 = vpop.eup %2213 }
 0x910   : > { %v1660_v46 = vadd.f32 1.0, %v2214_v45 }
 0x912   : > { %2217 = vrcp.f32 %v1660_v46 }
 0x91b   : > { %v2216_v47 = vpop.eup %2215 }
 0x91c   : > { %1665 = vst [vmem:[#allocation13] sm:$0xff] %v2216_v47 }
 0x91f   : > { %v2218_v48 = vpop.eup %2217 }
 0x920   : > { %1666 = vst [vmem:[#allocation13 + $0x8] sm:$0xff] %v2218_v48 }
 0x921 PF: > { %p2045_p1 = scmp.eq.s32.totalorder %s2555_s23, 1  ;;  %s2463_s6 = smov [#allocation13]  }
 0x922   : > { %s1676_s7 = sshll.u32 %s2463_s6, 4  ;;  %s1677_s7 = int_to_ptr.vmem [resolvable:$true] %s1676_s7 }
 0x923   : > { %s2353_s10 = scalar_lea.vmem %s1677_s7, 256  ;;  %p2360_p11 = scmp.lt.s32.totalorder %s1677_s7, %s1677_s7 }
 0x924   : > { %p2354_p2 = scmp.ne.s32.totalorder %s1677_s7, %s2353_s10  ;;  %p2361_p7 = scmp.lt.s32.totalorder %s2353_s10, %s2353_s10 }
 0x926   : > { %p2355_p13 = pnand %p2354_p2, %p2045_p1  ;;  %p2362_p9 = por %p2361_p7, %p2360_p11 }
 0x928   : > { %p2356_p5 = pneg %p2355_p13 }
 0x92a   : > { %p2363_p4 = pnand %p2362_p9, %p2356_p5 }
 0x92c   : > { %2366 = shalt.err (!%p2363_p4)
}
 0x92d   : > { %s2464_s25 = smov 128   ;;  %s2465_s26 = smov 8  }
 0x92e   : > { %s2847_s29 = sld [smem:[#allocation29_spill]] }
 0x934   : > { %2018 = dma.vmem_to_hbm [thread:$0]  (%p2045_p1), %s1677_s7, 256, %s2847_s29, [#allocation6], %s2464_s25, %s2464_s25, %s2465_s26  }
 0x935   : > { %2418 = dma.done.wait (%p2045_p1), [#allocation6], 256  }
 0x936   : > { %2420 = vsyncadd (%p2045_p1), [#allocation6], 4294967040 }
 0x937 PF: > { %s29_s22 = sadd.s32 1, %s2443_s22   ;;  %s2848_s12 = smov %s2655_s17 }
 0x938   : > { %p26_p8 = scmp.ge.s32.totalorder %s29_s22, 4   ;;  %s2849_s2 = sld [smem:[#allocation19_spill]] }
 0x939   : > { %s2850_s17 = smov %s2427_s18  ;;  %s2851_s18 = smov %s2431_s19 }
 0x93a   : > { %s2852_s19 = smov %s2848_s12  ;;  %s2853_s20 = smov %s2439_s21 }
 0x93b   :  { %28 = sbr.rel (!%p26_p8) target bundleno = 19 (0x13), region = 136 }
 0x93e   : > { %s2854_s21 = smov %s2849_s2 }
 0x940   :  { %1692 = vsyncpa [#allocation5], 1 }
 0x941   :  { %1694 = vsyncpa [#allocation5 + $0x1], 1 }
 0x942   :  { %1695 = vsyncpa [#allocation8], 1 }
 0x943   :  { %1697 = vsyncpa [#allocation8 + $0x1], 1 }
 0x944   :  { %1698 = vsyncpa [#allocation11], 1 }
 0x945   :  { %1699 = vsyncpa [#allocation6], 1 }
 0x946   :  { %1701 = vsyncpa [#allocation6 + $0x1], 1 }

</bundles_post_ra>
